<compile_context>
chip_gen: v6e
topology: v6e:2x2x1
jax: 0.10.0
libtpu: 0.0.40
codegen_flags: <defaults>
</compile_context>

<pallas_src>
import functools
import math

import jax
import jax.numpy as jnp
from jax.experimental import pallas as pl
from jax.experimental.pallas import tpu as pltpu


def _pick_tile(n, cap, *, lane=False):
    """Largest tile <= cap that evenly divides n.

    lane=True prefers multiples of 128 (lane / MXU N-K dims), otherwise
    multiples of 8 (sublane dims).  Falls back to the full dimension when no
    aligned divisor exists (correct, but may exceed scoped VMEM for huge odd n).
    """
    if n <= cap:
        return n
    for unit in ((128, 8) if lane else (8,)):
        t = cap - cap % unit
        while t >= unit:
            if n % t == 0:
                return t
            t -= unit
    return n


# ------------------------- generic linear: y = x @ W + b (M/N/K tiled) -------------------------

def _linear_kernel(x_ref, w_ref, b_ref, o_ref, acc_ref):
    kk = pl.program_id(2)

    @pl.when(kk == 0)
    def _():
        acc_ref[...] = jnp.zeros_like(acc_ref)

    acc_ref[...] += jnp.dot(x_ref[...], w_ref[...],
                            preferred_element_type=jnp.float32)

    @pl.when(kk == pl.num_programs(2) - 1)
    def _():
        o_ref[...] = (acc_ref[...] + b_ref[...].astype(jnp.float32)).astype(o_ref.dtype)


def pallas_linear(x2d, w, b, *, row_tile_cap=512, col_tile_cap=512, k_tile_cap=1024):
    """x2d: (M, Din), w: (Din, Dout), b: (Dout,)  ->  (M, Dout)."""
    M, Din = x2d.shape
    Dout = w.shape[1]
    tm = _pick_tile(M, row_tile_cap)
    tn = _pick_tile(Dout, col_tile_cap, lane=True)
    tk = _pick_tile(Din, k_tile_cap, lane=True)
    b2 = b.reshape(1, Dout)
    # TODO(synk): constant-index blocks (bias; weight when K/N untiled) could be
    # single-buffered via pipeline_mode=pl.Buffered(1) to halve their VMEM
    # footprint (matters on v7x's 64 MiB); left at defaults for portability.
    return pl.pallas_call(
        _linear_kernel,
        out_shape=jax.ShapeDtypeStruct((M, Dout), x2d.dtype),
        grid=(M // tm, Dout // tn, Din // tk),
        in_specs=[
            pl.BlockSpec((tm, tk), lambda i, j, k: (i, k)),
            pl.BlockSpec((tk, tn), lambda i, j, k: (k, j)),
            pl.BlockSpec((1, tn), lambda i, j, k: (0, j)),
        ],
        out_specs=pl.BlockSpec((tm, tn), lambda i, j, k: (i, j)),
        scratch_shapes=[pltpu.VMEM((tm, tn), jnp.float32)],
        compiler_params=pltpu.CompilerParams(
            dimension_semantics=("parallel", "parallel", "arbitrary")),
    )(x2d, w, b2)


# ------------------------- fused QKV projection (reads X once, 3 outputs) -------------------------

def _qkv_proj_kernel(x_ref, wq_ref, wk_ref, wv_ref, bq_ref, bk_ref, bv_ref,
                     q_ref, k_ref, v_ref, qacc, kacc, vacc):
    kk = pl.program_id(1)

    @pl.when(kk == 0)
    def _():
        qacc[...] = jnp.zeros_like(qacc)
        kacc[...] = jnp.zeros_like(kacc)
        vacc[...] = jnp.zeros_like(vacc)

    x = x_ref[...]
    qacc[...] += jnp.dot(x, wq_ref[...], preferred_element_type=jnp.float32)
    kacc[...] += jnp.dot(x, wk_ref[...], preferred_element_type=jnp.float32)
    vacc[...] += jnp.dot(x, wv_ref[...], preferred_element_type=jnp.float32)

    @pl.when(kk == pl.num_programs(1) - 1)
    def _():
        q_ref[...] = (qacc[...] + bq_ref[...].astype(jnp.float32)).astype(q_ref.dtype)
        k_ref[...] = (kacc[...] + bk_ref[...].astype(jnp.float32)).astype(k_ref.dtype)
        v_ref[...] = (vacc[...] + bv_ref[...].astype(jnp.float32)).astype(v_ref.dtype)


def pallas_qkv_projection(x2d, wq, wk, wv, bq, bk, bv, *,
                          row_tile_cap=512, k_tile_cap=1024):
    """x2d: (M, Din); w*: (Din, Dout); b*: (Dout,) -> three (M, Dout) slabs."""
    M, Din = x2d.shape
    Dout = wq.shape[1]
    tm = _pick_tile(M, row_tile_cap)
    tk = _pick_tile(Din, k_tile_cap, lane=True)
    # TODO(synk): also tile Dout (N) here if output_dim grows beyond a few thousand.
    w_spec = pl.BlockSpec((tk, Dout), lambda i, k: (k, 0))
    b_spec = pl.BlockSpec((1, Dout), lambda i, k: (0, 0))
    o_spec = pl.BlockSpec((tm, Dout), lambda i, k: (i, 0))
    out_sds = jax.ShapeDtypeStruct((M, Dout), x2d.dtype)
    return pl.pallas_call(
        _qkv_proj_kernel,
        out_shape=(out_sds, out_sds, out_sds),
        grid=(M // tm, Din // tk),
        in_specs=[pl.BlockSpec((tm, tk), lambda i, k: (i, k)),
                  w_spec, w_spec, w_spec, b_spec, b_spec, b_spec],
        out_specs=(o_spec, o_spec, o_spec),
        scratch_shapes=[pltpu.VMEM((tm, Dout), jnp.float32),
                        pltpu.VMEM((tm, Dout), jnp.float32),
                        pltpu.VMEM((tm, Dout), jnp.float32)],
        compiler_params=pltpu.CompilerParams(
            dimension_semantics=("parallel", "arbitrary")),
    )(x2d, wq, wk, wv,
      bq.reshape(1, Dout), bk.reshape(1, Dout), bv.reshape(1, Dout))


# ------------------------- flash attention (no mask; scale pre-folded into Q) -------------------------

def _flash_attn_kernel(q_ref, k_ref, v_ref, o_ref, m_sc, l_sc, acc_sc, *, approx_recip):
    ki = pl.program_id(2)

    @pl.when(ki == 0)
    def _():
        m_sc[...] = jnp.full(m_sc.shape, -jnp.inf, jnp.float32)
        l_sc[...] = jnp.zeros(l_sc.shape, jnp.float32)
        acc_sc[...] = jnp.zeros(acc_sc.shape, jnp.float32)

    q = q_ref[...]                 # (H, tq, hd)  (1/sqrt(hd) already folded into W_q)
    k = k_ref[...]                 # (H, tkv, hd)
    v = v_ref[...]                 # (H, tkv, hd)

    # per-head QK^T with f32 accumulation on the MXU
    s = jnp.einsum("hqd,hkd->hqk", q, k, preferred_element_type=jnp.float32)

    m_prev = m_sc[...]                                         # (H, tq, 1)
    m_new = jnp.maximum(m_prev, s.max(axis=-1, keepdims=True))
    alpha = jnp.exp(m_prev - m_new)
    p = jnp.exp(s - m_new)                                     # (H, tq, tkv) f32
    l_sc[...] = alpha * l_sc[...] + p.sum(axis=-1, keepdims=True)
    acc_sc[...] = alpha * acc_sc[...] + jnp.einsum(
        "hqk,hkd->hqd", p.astype(v.dtype), v, preferred_element_type=jnp.float32)
    m_sc[...] = m_new

    @pl.when(ki == pl.num_programs(2) - 1)
    def _():
        if approx_recip:
            inv_l = pl.reciprocal(l_sc[...], approx=True)   # EUP slot, ~free
        else:
            inv_l = 1.0 / l_sc[...]
        o_ref[...] = (acc_sc[...] * inv_l).astype(o_ref.dtype)


def pallas_flash_attention(q, k, v, *, q_tile_cap=256, kv_tile_cap=256,
                           approx_recip=True):
    """q/k/v: (B, H, S, hd) -> softmax(QK^T) @ V, shape (B, H, S, hd)."""
    B, H, S, hd = q.shape
    tq = _pick_tile(S, q_tile_cap)
    tkv = _pick_tile(S, kv_tile_cap, lane=True)   # lane / MXU-N dim: prefer 128-multiples
    grid = (B, S // tq, S // tkv)

    kern = functools.partial(_flash_attn_kernel, approx_recip=approx_recip)

    q_spec = pl.BlockSpec((None, H, tq, hd), lambda b, qi, ki: (b, 0, qi, 0))
    kv_spec = pl.BlockSpec((None, H, tkv, hd), lambda b, qi, ki: (b, 0, ki, 0))
    # TODO(synk): head_dim < 128 makes the output writeback a narrow/masked store;
    # the torch raw-reshape contract pins this layout, so only head_dim >= 128
    # deployments get a lane-dense store.
    o_spec = pl.BlockSpec((None, H, tq, hd), lambda b, qi, ki: (b, 0, qi, 0))

    return pl.pallas_call(
        kern,
        out_shape=jax.ShapeDtypeStruct((B, H, S, hd), q.dtype),
        grid=grid,
        in_specs=[q_spec, kv_spec, kv_spec],
        out_specs=o_spec,
        scratch_shapes=[
            pltpu.VMEM((H, tq, 1), jnp.float32),      # running row max
            pltpu.VMEM((H, tq, 1), jnp.float32),      # running denominator
            pltpu.VMEM((H, tq, hd), jnp.float32),     # output accumulator
        ],
        compiler_params=pltpu.CompilerParams(
            dimension_semantics=("parallel", "parallel", "arbitrary")),
    )(q, k, v)


# ------------------------- forward (matches torch module) -------------------------

def _split_qkv_params(w_in, b_in, num_heads, head_dim):
    """One-time column permutation of the QKV projection into Q/K/V slabs.

    torch: (B,S,3*Dout) -> raw reshape (B,H,S,3*hd) -> chunk(3, -1).  Viewing the
    projection columns as (H, 3, hd), the chunk-c result equals
    (X @ W[:, :, c, :].reshape(Din,Dout) + b[:, c, :]) raw-reshaped to (B,H,S,hd).
    The 1/sqrt(hd) softmax scale is folded into the Q slab.
    """
    Din = w_in.shape[0]
    Dout = num_heads * head_dim
    scale = 1.0 / math.sqrt(head_dim)
    w4 = w_in.reshape(Din, num_heads, 3, head_dim)
    b3 = b_in.reshape(num_heads, 3, head_dim)
    wq = (w4[:, :, 0, :] * scale).reshape(Din, Dout)
    wk = w4[:, :, 1, :].reshape(Din, Dout)
    wv = w4[:, :, 2, :].reshape(Din, Dout)
    bq = (b3[:, 0, :] * scale).reshape(Dout)
    bk = b3[:, 1, :].reshape(Dout)
    bv = b3[:, 2, :].reshape(Dout)
    return wq, wk, wv, bq, bk, bv


@functools.partial(jax.jit,
                   static_argnames=("num_heads", "compute_dtype", "approx_recip"))
def multi_head_attention_forward(x, params, num_heads, compute_dtype=None,
                                 approx_recip=True):
    B, S, Din = x.shape
    dout3 = params["w_in"].shape[1]
    output_dim = dout3 // 3
    head_dim = output_dim // num_heads

    wq, wk, wv, bq, bk, bv = _split_qkv_params(
        params["w_in"], params["b_in"], num_heads, head_dim)
    w_out, b_out = params["w_out"], params["b_out"]

    if compute_dtype is not None:
        # bf16 operands halve HBM/VMEM traffic and double MXU throughput;
        # softmax stats / accumulators stay f32 inside the kernels.
        x = x.astype(compute_dtype)
        wq, wk, wv = (t.astype(compute_dtype) for t in (wq, wk, wv))
        bq, bk, bv = (t.astype(compute_dtype) for t in (bq, bk, bv))
        w_out = w_out.astype(compute_dtype)
        b_out = b_out.astype(compute_dtype)

    # Fused QKV projection: reads X once, emits contiguous Q / K / V slabs.
    qo, ko, vo = pallas_qkv_projection(x.reshape(B * S, Din), wq, wk, wv, bq, bk, bv)

    # Raw (free) views back to the torch module's (B, H, S, hd) head layout.
    q = qo.reshape(B, num_heads, S, head_dim)
    k = ko.reshape(B, num_heads, S, head_dim)
    v = vo.reshape(B, num_heads, S, head_dim)

    vals = pallas_flash_attention(q, k, v, approx_recip=approx_recip)  # (B,H,S,hd)
    vals = vals.reshape(B * S, num_heads * head_dim)                   # raw view (torch)

    out = pallas_linear(vals, w_out, b_out)
    return out.reshape(B, S, output_dim)


# ------------------------- pure-JAX reference for verification -------------------------

def reference_forward(x, params, num_heads):
    B, S, _ = x.shape
    dout3 = params["w_in"].shape[1]
    output_dim = dout3 // 3
    head_dim = output_dim // num_heads

    qkv = jnp.einsum("bsd,de->bse", x, params["w_in"]) + params["b_in"]
    qkv = qkv.reshape(B, num_heads, S, head_dim * 3)
    q, k, v = jnp.split(qkv, 3, axis=-1)
    s = jnp.einsum("bhqd,bhkd->bhqk", q, k) / math.sqrt(head_dim)
    w = jax.nn.softmax(s, axis=-1)
    vals = jnp.einsum("bhqk,bhkd->bhqd", w, v)
    vals = vals.reshape(B, S, head_dim * num_heads)
    return jnp.einsum("bsd,de->bse", vals, params["w_out"]) + params["b_out"]


# ------------------------- main -------------------------

if __name__ == "__main__":
    # module config: input_dim == output_dim (required for linear_layer_out to apply)
    B, S = 2, 8
    input_dim = output_dim = 32
    num_heads = 4

    key = jax.random.PRNGKey(0)
    k_x, k_win, k_bin, k_wout, k_bout = jax.random.split(key, 5)

    x = jax.random.normal(k_x, (B, S, input_dim), jnp.float32)
    params = {
        # nn.Linear(input_dim, output_dim*3): weight (3*Dout, Din) -> stored transposed
        "w_in": jax.random.normal(k_win, (input_dim, 3 * output_dim), jnp.float32)
                / math.sqrt(input_dim),
        "b_in": 0.01 * jax.random.normal(k_bin, (3 * output_dim,), jnp.float32),
        # nn.Linear(input_dim, output_dim): weight (Dout, Din) -> stored transposed
        "w_out": jax.random.normal(k_wout, (input_dim, output_dim), jnp.float32)
                 / math.sqrt(input_dim),
        "b_out": 0.01 * jax.random.normal(k_bout, (output_dim,), jnp.float32),
    }

    ref = reference_forward(x, params, num_heads)

    # f32 path (strict check; tolerance covers the approximate EUP reciprocal).
    out = multi_head_attention_forward(x, params, num_heads=num_heads)
    out = jax.block_until_ready(out)
    assert out.shape == (B, S, output_dim)
    assert jnp.allclose(out, ref, atol=5e-3, rtol=5e-3), "f32 mismatch vs reference"

    # bf16 operand path (recommended for production; stats/accumulators stay f32).
    out_bf16 = multi_head_attention_forward(x, params, num_heads=num_heads,
                                            compute_dtype=jnp.bfloat16)
    out_bf16 = jax.block_until_ready(out_bf16)
    bf16_err = float(jnp.max(jnp.abs(out_bf16.astype(jnp.float32) - ref)))
    assert bf16_err < 0.25, f"bf16 mismatch vs reference: {bf16_err}"

    # TODO(synk): the `mask` branch of scaled_dot_product is unreachable in
    # forward() (mask is never passed), so the causal-mask path is not implemented.
    print("KERNEL_OK")
</pallas_src>

<mosaic_0001>
module attributes {stable_mosaic.version = 11 : i64} {
  func.func @_qkv_proj_kernel(%arg0: i32, %arg1: i32, %arg2: memref<16x32xf32, #tpu.memory_space<vmem>>, %arg3: memref<32x32xf32, #tpu.memory_space<vmem>>, %arg4: memref<32x32xf32, #tpu.memory_space<vmem>>, %arg5: memref<32x32xf32, #tpu.memory_space<vmem>>, %arg6: memref<1x32xf32, #tpu.memory_space<vmem>>, %arg7: memref<1x32xf32, #tpu.memory_space<vmem>>, %arg8: memref<1x32xf32, #tpu.memory_space<vmem>>, %arg9: memref<16x32xf32, #tpu.memory_space<vmem>>, %arg10: memref<16x32xf32, #tpu.memory_space<vmem>>, %arg11: memref<16x32xf32, #tpu.memory_space<vmem>>, %arg12: memref<16x32xf32, #tpu.memory_space<vmem>>, %arg13: memref<16x32xf32, #tpu.memory_space<vmem>>, %arg14: memref<16x32xf32, #tpu.memory_space<vmem>>) attributes {dimension_semantics = [#tpu.dimension_semantics<parallel>, #tpu.dimension_semantics<arbitrary>], iteration_bounds = array<i64: 1, 1>, scalar_prefetch = 0 : i64, scratch_operands = 3 : i64, tpu.core_type = #tpu.core_type<tc>, window_params = [{transform_indices = @transform_0, window_bounds = array<i64: 16, 32>}, {transform_indices = @transform_1, window_bounds = array<i64: 32, 32>}, {transform_indices = @transform_2, window_bounds = array<i64: 32, 32>}, {transform_indices = @transform_3, window_bounds = array<i64: 32, 32>}, {pipeline_mode = #tpu.pipeline_mode<synchronous>, transform_indices = @transform_4, window_bounds = array<i64: 1, 32>}, {pipeline_mode = #tpu.pipeline_mode<synchronous>, transform_indices = @transform_5, window_bounds = array<i64: 1, 32>}, {pipeline_mode = #tpu.pipeline_mode<synchronous>, transform_indices = @transform_6, window_bounds = array<i64: 1, 32>}, {transform_indices = @transform_7, window_bounds = array<i64: 16, 32>}, {transform_indices = @transform_8, window_bounds = array<i64: 16, 32>}, {transform_indices = @transform_9, window_bounds = array<i64: 16, 32>}]} {
    %c0_i32 = arith.constant 0 : i32
    %0 = arith.cmpi eq, %arg1, %c0_i32 : i32
    %1 = arith.extui %0 : i1 to i32
    %c0_i32_0 = arith.constant 0 : i32
    %2 = arith.cmpi ne, %1, %c0_i32_0 : i32
    scf.if %2 {
      %cst_24 = arith.constant 0.000000e+00 : f32
      %22 = vector.broadcast %cst_24 : f32 to vector<16x32xf32>
      %c0_25 = arith.constant 0 : index
      %c0_26 = arith.constant 0 : index
      %23 = vector.load %arg12[%c0_25, %c0_26] : memref<16x32xf32, #tpu.memory_space<vmem>>, vector<16x32xf32>
      tpu.vector_store %arg12[%c0_25, %c0_26], %22 {strides = array<i32>} : memref<16x32xf32, #tpu.memory_space<vmem>>, vector<16x32xf32>,
      %cst_27 = arith.constant 0.000000e+00 : f32
      %24 = vector.broadcast %cst_27 : f32 to vector<16x32xf32>
      %c0_28 = arith.constant 0 : index
      %c0_29 = arith.constant 0 : index
      %25 = vector.load %arg13[%c0_28, %c0_29] : memref<16x32xf32, #tpu.memory_space<vmem>>, vector<16x32xf32>
      tpu.vector_store %arg13[%c0_28, %c0_29], %24 {strides = array<i32>} : memref<16x32xf32, #tpu.memory_space<vmem>>, vector<16x32xf32>,
      %cst_30 = arith.constant 0.000000e+00 : f32
      %26 = vector.broadcast %cst_30 : f32 to vector<16x32xf32>
      %c0_31 = arith.constant 0 : index
      %c0_32 = arith.constant 0 : index
      %27 = vector.load %arg14[%c0_31, %c0_32] : memref<16x32xf32, #tpu.memory_space<vmem>>, vector<16x32xf32>
      tpu.vector_store %arg14[%c0_31, %c0_32], %26 {strides = array<i32>} : memref<16x32xf32, #tpu.memory_space<vmem>>, vector<16x32xf32>,
    } else {
    }
    %c0 = arith.constant 0 : index
    %c0_1 = arith.constant 0 : index
    %3 = vector.load %arg2[%c0, %c0_1] : memref<16x32xf32, #tpu.memory_space<vmem>>, vector<16x32xf32>
    %c0_2 = arith.constant 0 : index
    %c0_3 = arith.constant 0 : index
    %4 = vector.load %arg12[%c0_2, %c0_3] : memref<16x32xf32, #tpu.memory_space<vmem>>, vector<16x32xf32>
    %c0_4 = arith.constant 0 : index
    %c0_5 = arith.constant 0 : index
    %5 = vector.load %arg3[%c0_4, %c0_5] : memref<32x32xf32, #tpu.memory_space<vmem>>, vector<32x32xf32>
    %cst = arith.constant dense<0.000000e+00> : vector<16x32xf32>
    %6 = tpu.matmul %3, %5, %cst {dimension_numbers = #tpu.dot_dimension_numbers<[1], [0], [0], [1], [0, 0, 1, 1], [], []>} : vector<16x32xf32>, vector<32x32xf32>, vector<16x32xf32> -> vector<16x32xf32>
    %7 = arith.addf %4, %6 : vector<16x32xf32>
    %c0_6 = arith.constant 0 : index
    %c0_7 = arith.constant 0 : index
    %8 = vector.load %arg12[%c0_6, %c0_7] : memref<16x32xf32, #tpu.memory_space<vmem>>, vector<16x32xf32>
    tpu.vector_store %arg12[%c0_6, %c0_7], %7 {strides = array<i32>} : memref<16x32xf32, #tpu.memory_space<vmem>>, vector<16x32xf32>,
    %c0_8 = arith.constant 0 : index
    %c0_9 = arith.constant 0 : index
    %9 = vector.load %arg13[%c0_8, %c0_9] : memref<16x32xf32, #tpu.memory_space<vmem>>, vector<16x32xf32>
    %c0_10 = arith.constant 0 : index
    %c0_11 = arith.constant 0 : index
    %10 = vector.load %arg4[%c0_10, %c0_11] : memref<32x32xf32, #tpu.memory_space<vmem>>, vector<32x32xf32>
    %cst_12 = arith.constant dense<0.000000e+00> : vector<16x32xf32>
    %11 = tpu.matmul %3, %10, %cst_12 {dimension_numbers = #tpu.dot_dimension_numbers<[1], [0], [0], [1], [0, 0, 1, 1], [], []>} : vector<16x32xf32>, vector<32x32xf32>, vector<16x32xf32> -> vector<16x32xf32>
    %12 = arith.addf %9, %11 : vector<16x32xf32>
    %c0_13 = arith.constant 0 : index
    %c0_14 = arith.constant 0 : index
    %13 = vector.load %arg13[%c0_13, %c0_14] : memref<16x32xf32, #tpu.memory_space<vmem>>, vector<16x32xf32>
    tpu.vector_store %arg13[%c0_13, %c0_14], %12 {strides = array<i32>} : memref<16x32xf32, #tpu.memory_space<vmem>>, vector<16x32xf32>,
    %c0_15 = arith.constant 0 : index
    %c0_16 = arith.constant 0 : index
    %14 = vector.load %arg14[%c0_15, %c0_16] : memref<16x32xf32, #tpu.memory_space<vmem>>, vector<16x32xf32>
    %c0_17 = arith.constant 0 : index
    %c0_18 = arith.constant 0 : index
    %15 = vector.load %arg5[%c0_17, %c0_18] : memref<32x32xf32, #tpu.memory_space<vmem>>, vector<32x32xf32>
    %cst_19 = arith.constant dense<0.000000e+00> : vector<16x32xf32>
    %16 = tpu.matmul %3, %15, %cst_19 {dimension_numbers = #tpu.dot_dimension_numbers<[1], [0], [0], [1], [0, 0, 1, 1], [], []>} : vector<16x32xf32>, vector<32x32xf32>, vector<16x32xf32> -> vector<16x32xf32>
    %17 = arith.addf %14, %16 : vector<16x32xf32>
    %c0_20 = arith.constant 0 : index
    %c0_21 = arith.constant 0 : index
    %18 = vector.load %arg14[%c0_20, %c0_21] : memref<16x32xf32, #tpu.memory_space<vmem>>, vector<16x32xf32>
    tpu.vector_store %arg14[%c0_20, %c0_21], %17 {strides = array<i32>} : memref<16x32xf32, #tpu.memory_space<vmem>>, vector<16x32xf32>,
    %c0_i32_22 = arith.constant 0 : i32
    %19 = arith.cmpi eq, %arg1, %c0_i32_22 : i32
    %20 = arith.extui %19 : i1 to i32
    %c0_i32_23 = arith.constant 0 : i32
    %21 = arith.cmpi ne, %20, %c0_i32_23 : i32
    scf.if %21 {
      %c0_24 = arith.constant 0 : index
      %c0_25 = arith.constant 0 : index
      %22 = vector.load %arg12[%c0_24, %c0_25] : memref<16x32xf32, #tpu.memory_space<vmem>>, vector<16x32xf32>
      %c0_26 = arith.constant 0 : index
      %c0_27 = arith.constant 0 : index
      %23 = vector.load %arg6[%c0_26, %c0_27] : memref<1x32xf32, #tpu.memory_space<vmem>>, vector<1x32xf32>
      %24 = vector.broadcast %23 : vector<1x32xf32> to vector<16x32xf32>
      %25 = arith.addf %22, %24 : vector<16x32xf32>
      %c0_28 = arith.constant 0 : index
      %c0_29 = arith.constant 0 : index
      %26 = vector.load %arg9[%c0_28, %c0_29] : memref<16x32xf32, #tpu.memory_space<vmem>>, vector<16x32xf32>
      tpu.vector_store %arg9[%c0_28, %c0_29], %25 {strides = array<i32>} : memref<16x32xf32, #tpu.memory_space<vmem>>, vector<16x32xf32>,
      %c0_30 = arith.constant 0 : index
      %c0_31 = arith.constant 0 : index
      %27 = vector.load %arg13[%c0_30, %c0_31] : memref<16x32xf32, #tpu.memory_space<vmem>>, vector<16x32xf32>
      %c0_32 = arith.constant 0 : index
      %c0_33 = arith.constant 0 : index
      %28 = vector.load %arg7[%c0_32, %c0_33] : memref<1x32xf32, #tpu.memory_space<vmem>>, vector<1x32xf32>
      %29 = vector.broadcast %28 : vector<1x32xf32> to vector<16x32xf32>
      %30 = arith.addf %27, %29 : vector<16x32xf32>
      %c0_34 = arith.constant 0 : index
      %c0_35 = arith.constant 0 : index
      %31 = vector.load %arg10[%c0_34, %c0_35] : memref<16x32xf32, #tpu.memory_space<vmem>>, vector<16x32xf32>
      tpu.vector_store %arg10[%c0_34, %c0_35], %30 {strides = array<i32>} : memref<16x32xf32, #tpu.memory_space<vmem>>, vector<16x32xf32>,
      %c0_36 = arith.constant 0 : index
      %c0_37 = arith.constant 0 : index
      %32 = vector.load %arg14[%c0_36, %c0_37] : memref<16x32xf32, #tpu.memory_space<vmem>>, vector<16x32xf32>
      %c0_38 = arith.constant 0 : index
      %c0_39 = arith.constant 0 : index
      %33 = vector.load %arg8[%c0_38, %c0_39] : memref<1x32xf32, #tpu.memory_space<vmem>>, vector<1x32xf32>
      %34 = vector.broadcast %33 : vector<1x32xf32> to vector<16x32xf32>
      %35 = arith.addf %32, %34 : vector<16x32xf32>
      %c0_40 = arith.constant 0 : index
      %c0_41 = arith.constant 0 : index
      %36 = vector.load %arg11[%c0_40, %c0_41] : memref<16x32xf32, #tpu.memory_space<vmem>>, vector<16x32xf32>
      tpu.vector_store %arg11[%c0_40, %c0_41], %35 {strides = array<i32>} : memref<16x32xf32, #tpu.memory_space<vmem>>, vector<16x32xf32>,
    } else {
    }
    return
  }
  func.func @transform_0(%arg0: i32, %arg1: i32) -> (i32, i32) {
    %c0_i32 = arith.constant 0 : i32
    return %arg0, %arg1 : i32, i32
  }
  func.func @transform_1(%arg0: i32, %arg1: i32) -> (i32, i32) {
    %c0_i32 = arith.constant 0 : i32
    %c0_i32_0 = arith.constant 0 : i32
    return %arg1, %c0_i32 : i32, i32
  }
  func.func @transform_2(%arg0: i32, %arg1: i32) -> (i32, i32) {
    %c0_i32 = arith.constant 0 : i32
    %c0_i32_0 = arith.constant 0 : i32
    return %arg1, %c0_i32 : i32, i32
  }
  func.func @transform_3(%arg0: i32, %arg1: i32) -> (i32, i32) {
    %c0_i32 = arith.constant 0 : i32
    %c0_i32_0 = arith.constant 0 : i32
    return %arg1, %c0_i32 : i32, i32
  }
  func.func @transform_4(%arg0: i32, %arg1: i32) -> (i32, i32) {
    %c0_i32 = arith.constant 0 : i32
    %c0_i32_0 = arith.constant 0 : i32
    %c0_i32_1 = arith.constant 0 : i32
    return %c0_i32, %c0_i32_0 : i32, i32
  }
  func.func @transform_5(%arg0: i32, %arg1: i32) -> (i32, i32) {
    %c0_i32 = arith.constant 0 : i32
    %c0_i32_0 = arith.constant 0 : i32
    %c0_i32_1 = arith.constant 0 : i32
    return %c0_i32, %c0_i32_0 : i32, i32
  }
  func.func @transform_6(%arg0: i32, %arg1: i32) -> (i32, i32) {
    %c0_i32 = arith.constant 0 : i32
    %c0_i32_0 = arith.constant 0 : i32
    %c0_i32_1 = arith.constant 0 : i32
    return %c0_i32, %c0_i32_0 : i32, i32
  }
  func.func @transform_7(%arg0: i32, %arg1: i32) -> (i32, i32) {
    %c0_i32 = arith.constant 0 : i32
    %c0_i32_0 = arith.constant 0 : i32
    return %arg0, %c0_i32 : i32, i32
  }
  func.func @transform_8(%arg0: i32, %arg1: i32) -> (i32, i32) {
    %c0_i32 = arith.constant 0 : i32
    %c0_i32_0 = arith.constant 0 : i32
    return %arg0, %c0_i32 : i32, i32
  }
  func.func @transform_9(%arg0: i32, %arg1: i32) -> (i32, i32) {
    %c0_i32 = arith.constant 0 : i32
    %c0_i32_0 = arith.constant 0 : i32
    return %arg0, %c0_i32 : i32, i32
  }
}

module attributes {stable_mosaic.version = 11 : i64} {
  func.func @_flash_attn_kernel(%arg0: i32, %arg1: i32, %arg2: i32, %arg3: memref<1x4x8x8xf32, #tpu.memory_space<vmem>>, %arg4: memref<1x4x8x8xf32, #tpu.memory_space<vmem>>, %arg5: memref<1x4x8x8xf32, #tpu.memory_space<vmem>>, %arg6: memref<1x4x8x8xf32, #tpu.memory_space<vmem>>, %arg7: memref<4x8x1xf32, #tpu.memory_space<vmem>>, %arg8: memref<4x8x1xf32, #tpu.memory_space<vmem>>, %arg9: memref<4x8x8xf32, #tpu.memory_space<vmem>>) attributes {dimension_semantics = [#tpu.dimension_semantics<parallel>, #tpu.dimension_semantics<parallel>, #tpu.dimension_semantics<arbitrary>], iteration_bounds = array<i64: 2, 1, 1>, scalar_prefetch = 0 : i64, scratch_operands = 3 : i64, tpu.core_type = #tpu.core_type<tc>, window_params = [{transform_indices = @transform_0, window_bounds = array<i64: 1, 4, 8, 8>}, {transform_indices = @transform_1, window_bounds = array<i64: 1, 4, 8, 8>}, {transform_indices = @transform_2, window_bounds = array<i64: 1, 4, 8, 8>}, {transform_indices = @transform_3, window_bounds = array<i64: 1, 4, 8, 8>}]} {
    %c0_i32 = arith.constant 0 : i32
    %0 = arith.cmpi eq, %arg2, %c0_i32 : i32
    %1 = arith.extui %0 : i1 to i32
    %c0_i32_0 = arith.constant 0 : i32
    %2 = arith.cmpi ne, %1, %c0_i32_0 : i32
    scf.if %2 {
      %cst_35 = arith.constant 0xFF800000 : f32
      %35 = vector.broadcast %cst_35 : f32 to vector<4x8x1xf32>
      %c0_36 = arith.constant 0 : index
      %c0_37 = arith.constant 0 : index
      %c0_38 = arith.constant 0 : index
      %36 = vector.load %arg7[%c0_36, %c0_37, %c0_38] : memref<4x8x1xf32, #tpu.memory_space<vmem>>, vector<4x8x1xf32>
      tpu.vector_store %arg7[%c0_36, %c0_37, %c0_38], %35 {strides = array<i32>} : memref<4x8x1xf32, #tpu.memory_space<vmem>>, vector<4x8x1xf32>,
      %cst_39 = arith.constant 0.000000e+00 : f32
      %37 = vector.broadcast %cst_39 : f32 to vector<4x8x1xf32>
      %c0_40 = arith.constant 0 : index
      %c0_41 = arith.constant 0 : index
      %c0_42 = arith.constant 0 : index
      %38 = vector.load %arg8[%c0_40, %c0_41, %c0_42] : memref<4x8x1xf32, #tpu.memory_space<vmem>>, vector<4x8x1xf32>
      tpu.vector_store %arg8[%c0_40, %c0_41, %c0_42], %37 {strides = array<i32>} : memref<4x8x1xf32, #tpu.memory_space<vmem>>, vector<4x8x1xf32>,
      %cst_43 = arith.constant 0.000000e+00 : f32
      %39 = vector.broadcast %cst_43 : f32 to vector<4x8x8xf32>
      %c0_44 = arith.constant 0 : index
      %c0_45 = arith.constant 0 : index
      %c0_46 = arith.constant 0 : index
      %40 = vector.load %arg9[%c0_44, %c0_45, %c0_46] : memref<4x8x8xf32, #tpu.memory_space<vmem>>, vector<4x8x8xf32>
      tpu.vector_store %arg9[%c0_44, %c0_45, %c0_46], %39 {strides = array<i32>} : memref<4x8x8xf32, #tpu.memory_space<vmem>>, vector<4x8x8xf32>,
    } else {
    }
    %c0 = arith.constant 0 : index
    %c0_1 = arith.constant 0 : index
    %c0_2 = arith.constant 0 : index
    %c0_3 = arith.constant 0 : index
    %3 = vector.load %arg3[%c0, %c0_1, %c0_2, %c0_3] : memref<1x4x8x8xf32, #tpu.memory_space<vmem>>, vector<1x4x8x8xf32>
    %4 = vector.shape_cast %3 : vector<1x4x8x8xf32> to vector<4x8x8xf32>
    %c0_4 = arith.constant 0 : index
    %c0_5 = arith.constant 0 : index
    %c0_6 = arith.constant 0 : index
    %c0_7 = arith.constant 0 : index
    %5 = vector.load %arg4[%c0_4, %c0_5, %c0_6, %c0_7] : memref<1x4x8x8xf32, #tpu.memory_space<vmem>>, vector<1x4x8x8xf32>
    %6 = vector.shape_cast %5 : vector<1x4x8x8xf32> to vector<4x8x8xf32>
    %c0_8 = arith.constant 0 : index
    %c0_9 = arith.constant 0 : index
    %c0_10 = arith.constant 0 : index
    %c0_11 = arith.constant 0 : index
    %7 = vector.load %arg5[%c0_8, %c0_9, %c0_10, %c0_11] : memref<1x4x8x8xf32, #tpu.memory_space<vmem>>, vector<1x4x8x8xf32>
    %8 = vector.shape_cast %7 : vector<1x4x8x8xf32> to vector<4x8x8xf32>
    "tpu.trace_start"() <{level = 10 : i32, message = "hqd,hkd->hqk"}> : () -> ()
    %cst = arith.constant dense<0.000000e+00> : vector<4x8x8xf32>
    %9 = tpu.matmul %4, %6, %cst {dimension_numbers = #tpu.dot_dimension_numbers<[2], [2], [1], [1], [0, 0, 0, 1, 1, 1], [0], [0]>} : vector<4x8x8xf32>, vector<4x8x8xf32>, vector<4x8x8xf32> -> vector<4x8x8xf32>
    "tpu.trace_stop"() : () -> ()
    %c0_12 = arith.constant 0 : index
    %c0_13 = arith.constant 0 : index
    %c0_14 = arith.constant 0 : index
    %10 = vector.load %arg7[%c0_12, %c0_13, %c0_14] : memref<4x8x1xf32, #tpu.memory_space<vmem>>, vector<4x8x1xf32>
    %cst_15 = arith.constant dense<0xFF800000> : vector<4x8xf32>
    %11 = vector.multi_reduction <maximumf>, %9, %cst_15 [2] : vector<4x8x8xf32> to vector<4x8xf32>
    %12 = vector.shape_cast %11 : vector<4x8xf32> to vector<4x8x1xf32>
    %13 = arith.maximumf %10, %12 : vector<4x8x1xf32>
    %14 = arith.subf %10, %13 : vector<4x8x1xf32>
    %15 = math.exp %14 : vector<4x8x1xf32>
    %16 = vector.broadcast %13 : vector<4x8x1xf32> to vector<4x8x8xf32>
    %17 = arith.subf %9, %16 : vector<4x8x8xf32>
    %18 = math.exp %17 : vector<4x8x8xf32>
    %c0_16 = arith.constant 0 : index
    %c0_17 = arith.constant 0 : index
    %c0_18 = arith.constant 0 : index
    %19 = vector.load %arg8[%c0_16, %c0_17, %c0_18] : memref<4x8x1xf32, #tpu.memory_space<vmem>>, vector<4x8x1xf32>
    %20 = arith.mulf %15, %19 : vector<4x8x1xf32>
    %cst_19 = arith.constant dense<0.000000e+00> : vector<4x8xf32>
    %21 = vector.multi_reduction <add>, %18, %cst_19 [2] : vector<4x8x8xf32> to vector<4x8xf32>
    %22 = vector.shape_cast %21 : vector<4x8xf32> to vector<4x8x1xf32>
    %23 = arith.addf %20, %22 : vector<4x8x1xf32>
    %c0_20 = arith.constant 0 : index
    %c0_21 = arith.constant 0 : index
    %c0_22 = arith.constant 0 : index
    %24 = vector.load %arg8[%c0_20, %c0_21, %c0_22] : memref<4x8x1xf32, #tpu.memory_space<vmem>>, vector<4x8x1xf32>
    tpu.vector_store %arg8[%c0_20, %c0_21, %c0_22], %23 {strides = array<i32>} : memref<4x8x1xf32, #tpu.memory_space<vmem>>, vector<4x8x1xf32>,
    %c0_23 = arith.constant 0 : index
    %c0_24 = arith.constant 0 : index
    %c0_25 = arith.constant 0 : index
    %25 = vector.load %arg9[%c0_23, %c0_24, %c0_25] : memref<4x8x8xf32, #tpu.memory_space<vmem>>, vector<4x8x8xf32>
    %26 = vector.broadcast %15 : vector<4x8x1xf32> to vector<4x8x8xf32>
    %27 = arith.mulf %26, %25 : vector<4x8x8xf32>
    "tpu.trace_start"() <{level = 10 : i32, message = "hqk,hkd->hqd"}> : () -> ()
    %cst_26 = arith.constant dense<0.000000e+00> : vector<4x8x8xf32>
    %28 = tpu.matmul %18, %8, %cst_26 {dimension_numbers = #tpu.dot_dimension_numbers<[2], [1], [1], [2], [0, 0, 0, 1, 1, 2], [0], [0]>} : vector<4x8x8xf32>, vector<4x8x8xf32>, vector<4x8x8xf32> -> vector<4x8x8xf32>
    "tpu.trace_stop"() : () -> ()
    %29 = arith.addf %27, %28 : vector<4x8x8xf32>
    %c0_27 = arith.constant 0 : index
    %c0_28 = arith.constant 0 : index
    %c0_29 = arith.constant 0 : index
    %30 = vector.load %arg9[%c0_27, %c0_28, %c0_29] : memref<4x8x8xf32, #tpu.memory_space<vmem>>, vector<4x8x8xf32>
    tpu.vector_store %arg9[%c0_27, %c0_28, %c0_29], %29 {strides = array<i32>} : memref<4x8x8xf32, #tpu.memory_space<vmem>>, vector<4x8x8xf32>,
    %c0_30 = arith.constant 0 : index
    %c0_31 = arith.constant 0 : index
    %c0_32 = arith.constant 0 : index
    %31 = vector.load %arg7[%c0_30, %c0_31, %c0_32] : memref<4x8x1xf32, #tpu.memory_space<vmem>>, vector<4x8x1xf32>
    tpu.vector_store %arg7[%c0_30, %c0_31, %c0_32], %13 {strides = array<i32>} : memref<4x8x1xf32, #tpu.memory_space<vmem>>, vector<4x8x1xf32>,
    %c0_i32_33 = arith.constant 0 : i32
    %32 = arith.cmpi eq, %arg2, %c0_i32_33 : i32
    %33 = arith.extui %32 : i1 to i32
    %c0_i32_34 = arith.constant 0 : i32
    %34 = arith.cmpi ne, %33, %c0_i32_34 : i32
    scf.if %34 {
      %c0_35 = arith.constant 0 : index
      %c0_36 = arith.constant 0 : index
      %c0_37 = arith.constant 0 : index
      %35 = vector.load %arg8[%c0_35, %c0_36, %c0_37] : memref<4x8x1xf32, #tpu.memory_space<vmem>>, vector<4x8x1xf32>
      %36 = tpu.reciprocal %35 {approx = true} : vector<4x8x1xf32> -> vector<4x8x1xf32>
      %c0_38 = arith.constant 0 : index
      %c0_39 = arith.constant 0 : index
      %c0_40 = arith.constant 0 : index
      %37 = vector.load %arg9[%c0_38, %c0_39, %c0_40] : memref<4x8x8xf32, #tpu.memory_space<vmem>>, vector<4x8x8xf32>
      %38 = vector.broadcast %36 : vector<4x8x1xf32> to vector<4x8x8xf32>
      %39 = arith.mulf %37, %38 : vector<4x8x8xf32>
      %c0_41 = arith.constant 0 : index
      %c0_42 = arith.constant 0 : index
      %c0_43 = arith.constant 0 : index
      %c0_44 = arith.constant 0 : index
      %40 = vector.load %arg6[%c0_41, %c0_42, %c0_43, %c0_44] : memref<1x4x8x8xf32, #tpu.memory_space<vmem>>, vector<1x4x8x8xf32>
      %41 = vector.shape_cast %40 : vector<1x4x8x8xf32> to vector<4x8x8xf32>
      %42 = vector.shape_cast %39 : vector<4x8x8xf32> to vector<1x4x8x8xf32>
      tpu.vector_store %arg6[%c0_41, %c0_42, %c0_43, %c0_44], %42 {strides = array<i32>} : memref<1x4x8x8xf32, #tpu.memory_space<vmem>>, vector<1x4x8x8xf32>,
    } else {
    }
    return
  }
  func.func @transform_0(%arg0: i32, %arg1: i32, %arg2: i32) -> (i32, i32, i32, i32) {
    %c0_i32 = arith.constant 0 : i32
    %c0_i32_0 = arith.constant 0 : i32
    %c0_i32_1 = arith.constant 0 : i32
    return %arg0, %c0_i32, %arg1, %c0_i32_0 : i32, i32, i32, i32
  }
  func.func @transform_1(%arg0: i32, %arg1: i32, %arg2: i32) -> (i32, i32, i32, i32) {
    %c0_i32 = arith.constant 0 : i32
    %c0_i32_0 = arith.constant 0 : i32
    %c0_i32_1 = arith.constant 0 : i32
    return %arg0, %c0_i32, %arg2, %c0_i32_0 : i32, i32, i32, i32
  }
  func.func @transform_2(%arg0: i32, %arg1: i32, %arg2: i32) -> (i32, i32, i32, i32) {
    %c0_i32 = arith.constant 0 : i32
    %c0_i32_0 = arith.constant 0 : i32
    %c0_i32_1 = arith.constant 0 : i32
    return %arg0, %c0_i32, %arg2, %c0_i32_0 : i32, i32, i32, i32
  }
  func.func @transform_3(%arg0: i32, %arg1: i32, %arg2: i32) -> (i32, i32, i32, i32) {
    %c0_i32 = arith.constant 0 : i32
    %c0_i32_0 = arith.constant 0 : i32
    %c0_i32_1 = arith.constant 0 : i32
    return %arg0, %c0_i32, %arg1, %c0_i32_0 : i32, i32, i32, i32
  }
}

module attributes {stable_mosaic.version = 11 : i64} {
  func.func @_linear_kernel(%arg0: i32, %arg1: i32, %arg2: i32, %arg3: memref<16x32xf32, #tpu.memory_space<vmem>>, %arg4: memref<32x32xf32, #tpu.memory_space<vmem>>, %arg5: memref<1x32xf32, #tpu.memory_space<vmem>>, %arg6: memref<16x32xf32, #tpu.memory_space<vmem>>, %arg7: memref<16x32xf32, #tpu.memory_space<vmem>>) attributes {dimension_semantics = [#tpu.dimension_semantics<parallel>, #tpu.dimension_semantics<parallel>, #tpu.dimension_semantics<arbitrary>], iteration_bounds = array<i64: 1, 1, 1>, scalar_prefetch = 0 : i64, scratch_operands = 1 : i64, tpu.core_type = #tpu.core_type<tc>, window_params = [{transform_indices = @transform_0, window_bounds = array<i64: 16, 32>}, {transform_indices = @transform_1, window_bounds = array<i64: 32, 32>}, {transform_indices = @transform_2, window_bounds = array<i64: 1, 32>}, {transform_indices = @transform_3, window_bounds = array<i64: 16, 32>}]} {
    %c0_i32 = arith.constant 0 : i32
    %0 = arith.cmpi eq, %arg2, %c0_i32 : i32
    %1 = arith.extui %0 : i1 to i32
    %c0_i32_0 = arith.constant 0 : i32
    %2 = arith.cmpi ne, %1, %c0_i32_0 : i32
    scf.if %2 {
      %cst_10 = arith.constant 0.000000e+00 : f32
      %12 = vector.broadcast %cst_10 : f32 to vector<16x32xf32>
      %c0_11 = arith.constant 0 : index
      %c0_12 = arith.constant 0 : index
      %13 = vector.load %arg7[%c0_11, %c0_12] : memref<16x32xf32, #tpu.memory_space<vmem>>, vector<16x32xf32>
      tpu.vector_store %arg7[%c0_11, %c0_12], %12 {strides = array<i32>} : memref<16x32xf32, #tpu.memory_space<vmem>>, vector<16x32xf32>,
    } else {
    }
    %c0 = arith.constant 0 : index
    %c0_1 = arith.constant 0 : index
    %3 = vector.load %arg7[%c0, %c0_1] : memref<16x32xf32, #tpu.memory_space<vmem>>, vector<16x32xf32>
    %c0_2 = arith.constant 0 : index
    %c0_3 = arith.constant 0 : index
    %4 = vector.load %arg3[%c0_2, %c0_3] : memref<16x32xf32, #tpu.memory_space<vmem>>, vector<16x32xf32>
    %c0_4 = arith.constant 0 : index
    %c0_5 = arith.constant 0 : index
    %5 = vector.load %arg4[%c0_4, %c0_5] : memref<32x32xf32, #tpu.memory_space<vmem>>, vector<32x32xf32>
    %cst = arith.constant dense<0.000000e+00> : vector<16x32xf32>
    %6 = tpu.matmul %4, %5, %cst {dimension_numbers = #tpu.dot_dimension_numbers<[1], [0], [0], [1], [0, 0, 1, 1], [], []>} : vector<16x32xf32>, vector<32x32xf32>, vector<16x32xf32> -> vector<16x32xf32>
    %7 = arith.addf %3, %6 : vector<16x32xf32>
    %c0_6 = arith.constant 0 : index
    %c0_7 = arith.constant 0 : index
    %8 = vector.load %arg7[%c0_6, %c0_7] : memref<16x32xf32, #tpu.memory_space<vmem>>, vector<16x32xf32>
    tpu.vector_store %arg7[%c0_6, %c0_7], %7 {strides = array<i32>} : memref<16x32xf32, #tpu.memory_space<vmem>>, vector<16x32xf32>,
    %c0_i32_8 = arith.constant 0 : i32
    %9 = arith.cmpi eq, %arg2, %c0_i32_8 : i32
    %10 = arith.extui %9 : i1 to i32
    %c0_i32_9 = arith.constant 0 : i32
    %11 = arith.cmpi ne, %10, %c0_i32_9 : i32
    scf.if %11 {
      %c0_10 = arith.constant 0 : index
      %c0_11 = arith.constant 0 : index
      %12 = vector.load %arg7[%c0_10, %c0_11] : memref<16x32xf32, #tpu.memory_space<vmem>>, vector<16x32xf32>
      %c0_12 = arith.constant 0 : index
      %c0_13 = arith.constant 0 : index
      %13 = vector.load %arg5[%c0_12, %c0_13] : memref<1x32xf32, #tpu.memory_space<vmem>>, vector<1x32xf32>
      %14 = vector.broadcast %13 : vector<1x32xf32> to vector<16x32xf32>
      %15 = arith.addf %12, %14 : vector<16x32xf32>
      %c0_14 = arith.constant 0 : index
      %c0_15 = arith.constant 0 : index
      %16 = vector.load %arg6[%c0_14, %c0_15] : memref<16x32xf32, #tpu.memory_space<vmem>>, vector<16x32xf32>
      tpu.vector_store %arg6[%c0_14, %c0_15], %15 {strides = array<i32>} : memref<16x32xf32, #tpu.memory_space<vmem>>, vector<16x32xf32>,
    } else {
    }
    return
  }
  func.func @transform_0(%arg0: i32, %arg1: i32, %arg2: i32) -> (i32, i32) {
    %c0_i32 = arith.constant 0 : i32
    return %arg0, %arg2 : i32, i32
  }
  func.func @transform_1(%arg0: i32, %arg1: i32, %arg2: i32) -> (i32, i32) {
    %c0_i32 = arith.constant 0 : i32
    return %arg2, %arg1 : i32, i32
  }
  func.func @transform_2(%arg0: i32, %arg1: i32, %arg2: i32) -> (i32, i32) {
    %c0_i32 = arith.constant 0 : i32
    %c0_i32_0 = arith.constant 0 : i32
    return %c0_i32, %arg1 : i32, i32
  }
  func.func @transform_3(%arg0: i32, %arg1: i32, %arg2: i32) -> (i32, i32) {
    %c0_i32 = arith.constant 0 : i32
    return %arg0, %arg1 : i32, i32
  }
}

</mosaic_0001>

<bundles_post_ra>
// kernel: squeeze.11
= control target key start
LH: loop header
LB: loop body
LE: loop exit
PB: predicated region body
PF: predicated region fallthrough
CT: control target
= control target key end

     0   :  { %vm8_vm0 = vcmask 64512   ;;  %s40_s8 = smov 8   ;;  %s41_s9 = smov 16   ;;  %vm14_vm1 = vcmask 261312   ;;  %vm20_vm2 = vcmask 195712   ;;  %vm26_vm3 = vcmask 130112   ;;  %s58_s0 = inlined_call_operand.vmem [shape: f32[4,8], index: 0, kind: input, shape index: {}]   ;;  %s59_s1 = inlined_call_operand.vmem [shape: f32[1,32], index: 1, kind: output, shape index: {}]  }
   0x1   :  { %v5_v0 = vld [vmem:[%s58_s0] sm:$0xf]  ;;  %s39_s0 = smov 24  }
   0x2   :  { %6 = vst [vmem:[#allocation1] sm:$0xf] %v5_v0 }
   0x9   :  { %v11_v1 = vld [vmem:[#allocation1 + $0x3] sm:$0x1]   ;;  %v23_v2 = vld [vmem:[#allocation1 + $0x1] sm:$0x1]   ;;  %v7_v3 = vld [vmem:[#allocation1] sm:$0x1]  }
   0xa   :  { %12 = vrot.lane.b32.xlu0 %v11_v1, %s39_s0  ;;  %24 = vrot.lane.b32.xlu1 %v23_v2, %s40_s8  ;;  %v17_v4 = vld [vmem:[#allocation1 + $0x2] sm:$0x1]   ;;  %9 = vst.msk [vmem:[#allocation0] sm:$0x1] %vm8_vm0, %v7_v3  }
   0xe   :  { %18 = vrot.lane.b32.xlu0 %v17_v4, %s41_s9 }
  0x7c   :  { %v13_v5 = vpop.permute.xlu0 %12   ;;  %v25_v6 = vpop.permute.xlu1 %24  }
  0x7d   :  { %15 = vst.msk [vmem:[#allocation0] sm:$0x1] %vm14_vm1, %v13_v5  }
  0x80   :  { %v19_v7 = vpop.permute.xlu0 %18  }
  0x81   :  { %21 = vst.msk [vmem:[#allocation0] sm:$0x1] %vm20_vm2, %v19_v7  }
  0x82   :  { %27 = vst.msk [vmem:[#allocation0] sm:$0x1] %vm26_vm3, %v25_v6  }
  0x89   :  { %v32_v8 = vld [vmem:[#allocation0] sm:$0x1] }
  0x8a   :  { %35 = vst [vmem:[%s59_s1] sm:$0x1] %v32_v8 }

// kernel: multi_head_attention_forward.5
= control target key start
LH: loop header
LB: loop body
LE: loop exit
PB: predicated region body
PF: predicated region fallthrough
CT: control target
= control target key end

     0   :  { %vm19_vm0 = vcmask 261120   ;;  %v194_v3 = vmov 0.0   ;;  %s250_s0 = inlined_call_operand.vmem [shape: f32[16,32], index: 0, kind: input, shape index: {}]   ;;  %s251_s1 = inlined_call_operand.vmem [shape: f32[32,32], index: 1, kind: input, shape index: {}]   ;;  %s252_s2 = inlined_call_operand.vmem [shape: f32[1,32], index: 2, kind: input, shape index: {}]   ;;  %s253_s3 = inlined_call_operand.hbm [shape: f32[16,32], index: 3, kind: output, shape index: {}]  }
   0x1   :  { %v29_v0 = vld [vmem:[%s251_s1 + $0x18] sm:$0xff]  ;;  %v28_v1 = vld [vmem:[%s251_s1 + $0x10] sm:$0xff]  ;;  %v24_v2 = vld [vmem:[%s250_s0] sm:$0xff]  ;;  %21 = vst.msk [vmem:[#allocation2 + $0x8] sm:$0xff] %vm19_vm0, %v194_v3 }
   0x2   :  { %157 = vmatprep.subr.mxu0 %v29_v0  ;;  %20 = vst.msk [vmem:[#allocation2] sm:$0xff] %vm19_vm0, %v194_v3  ;;  %v27_v4 = vld [vmem:[%s251_s1 + $0x8] sm:$0xff]  ;;  %165 = vmatprep.mubr.msk.f32.mxu0 %vm19_vm0, %v24_v2 }
   0x3   :  { %158 = vmatpush3.msra.mxu0 %v29_v0 }
   0x4   :  { %8 = vsyncpa [#allocation4], 0  ;;  %159 = vmatprep.subr.mxu0 %v28_v1  ;;  %v26_v5 = vld [vmem:[%s251_s1] sm:$0xff]  ;;  %v25_v6 = vld [vmem:[%s250_s0 + $0x8] sm:$0xff]  ;;  %s195_s25 = smov [#allocation3]  }
   0x5   :  { %160 = vmatpush3.msra.mxu0 %v28_v1  ;;  %v150_v13 = vld [vmem:[%s252_s2] ss:$0 sm:$0xff]  ;;  %s137_s0 = sshll.u32 %s195_s25, 4  ;;  %s138_s0 = int_to_ptr.vmem [resolvable:$true] %s137_s0 }
   0x6   :  { %161 = vmatprep.subr.mxu0 %v27_v4  ;;  %s172_s26 = scalar_lea.vmem %s138_s0, 256  ;;  %p177_p1 = scmp.lt.s32.totalorder %s138_s0, %s138_s0 }
   0x7   :  { %162 = vmatpush3.msra.mxu0 %v27_v4  ;;  %p173_p0 = scmp.ne.s32.totalorder %s138_s0, %s172_s26  ;;  %p178_p2 = scmp.lt.s32.totalorder %s172_s26, %s172_s26 }
   0x8   :  { %163 = vmatprep.subr.mxu0 %v26_v5  ;;  %v23_v7 = vld [vmem:[#allocation2 + $0x8] sm:$0xff] }
   0x9   :  { %164 = vmatpush3.msra.mxu0 %v26_v5  ;;  %v22_v9 = vld [vmem:[#allocation2] sm:$0xff]  ;;  %p179_p3 = por %p178_p2, %p177_p1 }
   0xa   :  { %166 = vmatmul.mubr.msk.f32.vlgmr.msra.gmra.mxu0 %vm19_vm0, %v25_v6 }
   0xb   :  { %p180_p4 = pnand %p179_p3, %p173_p0 }
  0xca   :  { %v167_v8 = vpop.f32.mrf.mxu0 }
  0xcb   :  { %v113_v10 = vadd.f32 %v167_v8, %v23_v7 }
  0xcc   :  { %v103_v11 = vpop.f32.mrf.mxu0 }
  0xcd   :  { %115 = vst.msk [vmem:[#allocation2 + $0x8] sm:$0xff] %vm19_vm0, %v113_v10  ;;  %v112_v12 = vadd.f32 %v103_v11, %v22_v9 }
  0xcf   :  { %114 = vst.msk [vmem:[#allocation2] sm:$0xff] %vm19_vm0, %v112_v12 }
  0xd4   :  { %v120_v14 = vld [vmem:[#allocation2 + $0x8] sm:$0xff] }
  0xd5   :  { %v129_v15 = vadd.f32 %v150_v13, %v120_v14 }
  0xd6   :  { %v119_v16 = vld [vmem:[#allocation2] sm:$0xff] }
  0xd7   :  { %v128_v17 = vadd.f32 %v150_v13, %v119_v16  ;;  %131 = vst.msk [vmem:[#allocation3 + $0x8] sm:$0xff] %vm19_vm0, %v129_v15 }
  0xd9   :  { %130 = vst.msk [vmem:[#allocation3] sm:$0xff] %vm19_vm0, %v128_v17 }
  0xda   :  { %183 = shalt.err (!%p180_p4)
}
  0xdb   :  { %s196_s27 = smov 128   ;;  %s197_s2 = smov 8  }
  0xdc   :  { %143 = dma.vmem_to_hbm [thread:$0]  %s138_s0, 256, %s253_s3, [#allocation4], %s196_s27, %s196_s27, %s197_s2  }
  0xdd   :  { %192 = dma.done.wait [#allocation4], 256  }
  0xde   :  { %193 = vsyncadd [#allocation4], 4294967040 }
  0xdf   :  { %147 = vsyncpa [#allocation4], 1 }

// kernel: multi_head_attention_forward.3
= control target key start
LH: loop header
LB: loop body
LE: loop exit
PB: predicated region body
PF: predicated region fallthrough
CT: control target
= control target key end

     0   :  { %vm33_vm0 = vcmask 261120   ;;  %v419_v2 = vmov 0.0   ;;  %s563_s1 = inlined_call_operand.vmem [shape: f32[32,32], index: 1, kind: input, shape index: {}]   ;;  %s564_s2 = inlined_call_operand.vmem [shape: f32[32,32], index: 2, kind: input, shape index: {}]   ;;  %s565_s0 = inlined_call_operand.vmem [shape: f32[16,32], index: 0, kind: input, shape index: {}]   ;;  %s566_s3 = inlined_call_operand.vmem [shape: f32[32,32], index: 3, kind: input, shape index: {}]   ;;  %s567_s4 = inlined_call_operand.vmem [shape: f32[1,32], index: 4, kind: input, shape index: {}]   ;;  %s568_s5 = inlined_call_operand.vmem [shape: f32[1,32], index: 5, kind: input, shape index: {}]   ;;  %s569_s7 = inlined_call_operand.vmem [shape: f32[16,32], index: 7, kind: output, shape index: {0}]   ;;  %s570_s6 = inlined_call_operand.vmem [shape: f32[1,32], index: 6, kind: input, shape index: {}]   ;;  %s571_s8 = inlined_call_operand.vmem [shape: f32[16,32], index: 8, kind: output, shape index: {1}]   ;;  %s572_s9 = inlined_call_operand.vmem [shape: f32[16,32], index: 9, kind: output, shape index: {2}]  }
   0x1   :  { %v47_v0 = vld [vmem:[%s563_s1 + $0x18] sm:$0xff]  ;;  %v46_v1 = vld [vmem:[%s563_s1 + $0x10] sm:$0xff]  ;;  %35 = vst.msk [vmem:[#allocation2 + $0x8] sm:$0xff] %vm33_vm0, %v419_v2  ;;  %34 = vst.msk [vmem:[#allocation2] sm:$0xff] %vm33_vm0, %v419_v2 }
   0x2   :  { %36 = vst.msk [vmem:[#allocation3] sm:$0xff] %vm33_vm0, %v419_v2  ;;  %37 = vst.msk [vmem:[#allocation3 + $0x8] sm:$0xff] %vm33_vm0, %v419_v2  ;;  %385 = vmatprep.subr.mxu0 %v47_v0  ;;  %v139_v3 = vld [vmem:[%s564_s2 + $0x18] sm:$0xff]  ;;  %v40_v4 = vld [vmem:[%s565_s0] sm:$0xff] }
   0x3   :  { %38 = vst.msk [vmem:[#allocation4] sm:$0xff] %vm33_vm0, %v419_v2  ;;  %39 = vst.msk [vmem:[#allocation4 + $0x8] sm:$0xff] %vm33_vm0, %v419_v2  ;;  %386 = vmatpush3.msra.mxu0 %v47_v0  ;;  %v45_v5 = vld [vmem:[%s563_s1 + $0x8] sm:$0xff]  ;;  %396 = vmatprep.subr.mxu1 %v139_v3  ;;  %v138_v6 = vld [vmem:[%s564_s2 + $0x10] sm:$0xff] }
   0x4   :  { %387 = vmatprep.subr.mxu0 %v46_v1  ;;  %393 = vmatprep.mubr.msk.f32.mxu0 %vm33_vm0, %v40_v4  ;;  %v44_v7 = vld [vmem:[%s563_s1] sm:$0xff]  ;;  %v137_v8 = vld [vmem:[%s564_s2 + $0x8] sm:$0xff]  ;;  %v224_v10 = vld [vmem:[%s566_s3 + $0x18] sm:$0xff] }
   0x5   :  { %388 = vmatpush3.msra.mxu0 %v46_v1  ;;  %397 = vmatpush3.msra.mxu1 %v139_v3  ;;  %v41_v9 = vld [vmem:[%s565_s0 + $0x8] sm:$0xff]  ;;  %v136_v11 = vld [vmem:[%s564_s2] sm:$0xff]  ;;  %v223_v12 = vld [vmem:[%s566_s3 + $0x10] sm:$0xff] }
   0x6   :  { %389 = vmatprep.subr.mxu0 %v45_v5  ;;  %398 = vmatprep.subr.mxu1 %v138_v6  ;;  %v222_v13 = vld [vmem:[%s566_s3 + $0x8] sm:$0xff]  ;;  %v221_v14 = vld [vmem:[%s566_s3] sm:$0xff] }
   0x7   :  { %390 = vmatpush3.msra.mxu0 %v45_v5  ;;  %399 = vmatpush3.msra.mxu1 %v138_v6  ;;  %v364_v28 = vld [vmem:[%s567_s4] ss:$0 sm:$0xff] }
   0x8   :  { %391 = vmatprep.subr.mxu0 %v44_v7  ;;  %400 = vmatprep.subr.mxu1 %v137_v8  ;;  %v43_v15 = vld [vmem:[#allocation2 + $0x8] sm:$0xff]  ;;  %v42_v17 = vld [vmem:[#allocation2] sm:$0xff] }
   0x9   :  { %392 = vmatpush3.msra.mxu0 %v44_v7  ;;  %401 = vmatpush3.msra.mxu1 %v137_v8  ;;  %v135_v20 = vld [vmem:[#allocation3 + $0x8] sm:$0xff]  ;;  %v134_v23 = vld [vmem:[#allocation3] sm:$0xff]  ;;  %v365_v37 = vld [vmem:[%s568_s5] ss:$0 sm:$0xff] }
   0xa   :  { %394 = vmatmul.mubr.msk.f32.vlgmr.msra.gmra.mxu0 %vm33_vm0, %v41_v9  ;;  %407 = vmatprep.subr.mxu0 %v224_v10  ;;  %v220_v26 = vld [vmem:[#allocation4 + $0x8] sm:$0xff]  ;;  %v219_v30 = vld [vmem:[#allocation4] sm:$0xff] }
   0xb   :  { %408 = vmatpush3.msra.mxu0 %v224_v10  ;;  %402 = vmatprep.subr.mxu1 %v136_v11  ;;  %v366_v42 = vld [vmem:[%s570_s6] ss:$0 sm:$0xff] }
   0xc   :  { %409 = vmatprep.subr.mxu0 %v223_v12  ;;  %403 = vmatpush3.msra.mxu1 %v136_v11 }
   0xd   :  { %410 = vmatpush3.msra.mxu0 %v223_v12  ;;  %404 = vmatprep.mubr.msk.f32.mxu1 %vm33_vm0, %v40_v4 }
   0xe   :  { %411 = vmatprep.subr.mxu0 %v222_v13  ;;  %405 = vmatmul.mubr.msk.f32.vlgmr.msra.gmra.mxu1 %vm33_vm0, %v41_v9 }
   0xf   :  { %412 = vmatpush3.msra.mxu0 %v222_v13  ;;  %415 = vmatprep.mubr.msk.f32.mxu0 %vm33_vm0, %v40_v4 }
  0x10   :  { %413 = vmatprep.subr.mxu0 %v221_v14 }
  0x11   :  { %414 = vmatpush3.msra.mxu0 %v221_v14 }
  0x12   :  { %416 = vmatmul.mubr.msk.f32.vlgmr.msra.gmra.mxu0 %vm33_vm0, %v41_v9 }
  0xca   :  { %v395_v16 = vpop.f32.mrf.mxu0 }
  0xcb   :  { %v131_v18 = vadd.f32 %v395_v16, %v43_v15 }
  0xcc   :  { %v121_v19 = vpop.f32.mrf.mxu0 }
  0xcd   :  { %133 = vst.msk [vmem:[#allocation2 + $0x8] sm:$0xff] %vm33_vm0, %v131_v18  ;;  %v130_v21 = vadd.f32 %v121_v19, %v42_v17 }
  0xce   :  { %v406_v22 = vpop.f32.mrf.mxu1 }
  0xcf   :  { %132 = vst.msk [vmem:[#allocation2] sm:$0xff] %vm33_vm0, %v130_v21  ;;  %v216_v24 = vadd.f32 %v406_v22, %v135_v20 }
  0xd0   :  { %v206_v25 = vpop.f32.mrf.mxu1 }
  0xd1   :  { %218 = vst.msk [vmem:[#allocation3 + $0x8] sm:$0xff] %vm33_vm0, %v216_v24  ;;  %v215_v27 = vadd.f32 %v206_v25, %v134_v23 }
  0xd2   :  { %v417_v29 = vpop.f32.mrf.mxu0 }
  0xd3   :  { %217 = vst.msk [vmem:[#allocation3] sm:$0xff] %vm33_vm0, %v215_v27  ;;  %v301_v31 = vadd.f32 %v417_v29, %v220_v26 }
  0xd4   :  { %v308_v32 = vld [vmem:[#allocation2 + $0x8] sm:$0xff]  ;;  %v291_v33 = vpop.f32.mrf.mxu0 }
  0xd5   :  { %v317_v34 = vadd.f32 %v364_v28, %v308_v32  ;;  %303 = vst.msk [vmem:[#allocation4 + $0x8] sm:$0xff] %vm33_vm0, %v301_v31  ;;  %v300_v35 = vadd.f32 %v291_v33, %v219_v30 }
  0xd6   :  { %v307_v36 = vld [vmem:[#allocation2] sm:$0xff] }
  0xd7   :  { %319 = vst.msk [vmem:[%s569_s7 + $0x8] sm:$0xff] %vm33_vm0, %v317_v34  ;;  %v316_v38 = vadd.f32 %v364_v28, %v307_v36  ;;  %302 = vst.msk [vmem:[#allocation4] sm:$0xff] %vm33_vm0, %v300_v35 }
  0xd8   :  { %v321_v39 = vld [vmem:[#allocation3 + $0x8] sm:$0xff] }
  0xd9   :  { %318 = vst.msk [vmem:[%s569_s7] sm:$0xff] %vm33_vm0, %v316_v38  ;;  %v330_v40 = vadd.f32 %v365_v37, %v321_v39 }
  0xda   :  { %v320_v41 = vld [vmem:[#allocation3] sm:$0xff] }
  0xdb   :  { %332 = vst.msk [vmem:[%s571_s8 + $0x8] sm:$0xff] %vm33_vm0, %v330_v40  ;;  %v329_v43 = vadd.f32 %v365_v37, %v320_v41 }
  0xdc   :  { %v334_v44 = vld [vmem:[#allocation4 + $0x8] sm:$0xff] }
  0xdd   :  { %331 = vst.msk [vmem:[%s571_s8] sm:$0xff] %vm33_vm0, %v329_v43  ;;  %v343_v45 = vadd.f32 %v366_v42, %v334_v44 }
  0xde   :  { %v333_v46 = vld [vmem:[#allocation4] sm:$0xff] }
  0xdf   :  { %345 = vst.msk [vmem:[%s572_s9 + $0x8] sm:$0xff] %vm33_vm0, %v343_v45  ;;  %v342_v47 = vadd.f32 %v366_v42, %v333_v46 }
  0xe1   :  { %344 = vst.msk [vmem:[%s572_s9] sm:$0xff] %vm33_vm0, %v342_v47 }

// kernel: multi_head_attention_forward.4
= control target key start
LH: loop header
LB: loop body
LE: loop exit
PB: predicated region body
PF: predicated region fallthrough
CT: control target
= control target key end

     0   :  { %s1385_s12 = smov 0   ;;  %s1387_s13 = smov 0   ;;  %s1533_s0 = inlined_call_operand.vmem [shape: f32[2,4,8,8], index: 0, kind: input, shape index: {}]   ;;  %s1534_s1 = inlined_call_operand.vmem [shape: f32[2,4,8,8], index: 1, kind: input, shape index: {}]   ;;  %s1535_s2 = inlined_call_operand.vmem [shape: f32[2,4,8,8], index: 2, kind: input, shape index: {}]   ;;  %s1536_s3 = inlined_call_operand.vmem [shape: f32[2,4,8,8], index: 3, kind: output, shape index: {}]  }
   0x1   :  { %s1389_s14 = smov 0  }
   0x2 LB: > { %s32_s15 = sadd.s32 1, %s1355_s13  ;;  %p1200_p0 = scmp.ge.s32.totalorder %s1359_s14, 1  ;;  %s1359_s14 = sphi %s1389_s14, %s13_s14   ;;  %s1355_s13 = sphi %s1387_s13, %s1538_s13   ;;  %s1351_s12 = sphi %s1385_s12, %s1537_s12  }
   0x3   : > { %p34_p1 = scmp.ge.s32.totalorder %s32_s15, 2  ;;  %p193_p2 = scmp.lt.s32.totalorder %s1359_s14, 3 }
   0x5   : > { %s1540_s15 = smov (%p34_p1, %s32_s15), 0  ;;  %p194_p3 = pnand %p1200_p0, %p193_p2 }
   0x6   : > { %p239_p4 = scmp.lt.s32.totalorder (!%p194_p3), %s1351_s12, 1 }
   0x7   : > { %197 = sbr.rel (%p194_p3) target bundleno = 797 (0x31d), region = 32 }
   0xc   : > { %vm284_vm0 = vcmask 64512   ;;  %v1361_v0 = vmov 0.0   ;;  %s1542_s12 = smov (!%p239_p4, %s1351_s12), 1  ;;  %vm1362_vm1 = vmmov 0   ;;  %vm275_vm2 = vcmask 7168  }
   0xd   : > { %1243 = vmatprep.subr.mxu0 %v1361_v0  ;;  %285 = vst.msk [vmem:[#allocation4] sm:$0xff] %vm284_vm0, %v1361_v0  ;;  %286 = vst.msk [vmem:[#allocation4 + $0x8] sm:$0xff] %vm284_vm0, %v1361_v0  ;;  %1248 = vmatprep.subr.mxu1 %v1361_v0  ;;  %s1417_s16 = sshll.u32 %s1542_s12, 5  ;;  %v1363_v9 = vmov -inf   ;;  %v1364_v22 = vmov 0  }
   0xe   : > { %287 = vst.msk [vmem:[#allocation4 + $0x10] sm:$0xff] %vm284_vm0, %v1361_v0  ;;  %288 = vst.msk [vmem:[#allocation4 + $0x18] sm:$0xff] %vm284_vm0, %v1361_v0  ;;  %1245 = vmatprep.mubr.msk.f32.mxu0 %vm1362_vm1, %v1361_v0  ;;  %1250 = vmatprep.mubr.msk.f32.mxu1 %vm1362_vm1, %v1361_v0  ;;  %s254_s19 = scalar_lea.vmem %s1534_s1, %s1417_s16  ;;  %s246_s22 = scalar_lea.vmem %s1533_s0, %s1417_s16 }
   0xf   : > { %v293_v1 = vld [vmem:[%s254_s19] sm:$0xff]  ;;  %v294_v2 = vld [vmem:[%s254_s19 + $0x8] sm:$0xff]  ;;  %v295_v5 = vld [vmem:[%s254_s19 + $0x10] sm:$0xff]  ;;  %276 = vst.msk [vmem:[#allocation2] sm:$0xff] %vm275_vm2, %v1363_v9  ;;  %1311 = vset.pattern.permute.xlu0 %v1364_v22  ;;  %1312 = vset.pattern.permute.xlu1 %v1364_v22  ;;  %s1488_s25 = scalar_lea.vmem %s1535_s2, %s1417_s16  ;;  %s270_s28 = scalar_lea.vmem %s1536_s3, %s1417_s16 }
  0x10   : > { %1244 = vmatpush3.xpose.msk.msra.mxu0 %vm284_vm0, %v293_v1  ;;  %1249 = vmatpush3.xpose.msk.msra.mxu1 %vm284_vm0, %v294_v2  ;;  %v289_v3 = vld [vmem:[%s246_s22] sm:$0xff]  ;;  %v290_v4 = vld [vmem:[%s246_s22 + $0x8] sm:$0xff]  ;;  %v296_v6 = vld [vmem:[%s254_s19 + $0x18] sm:$0xff]  ;;  %277 = vst.msk [vmem:[#allocation2 + $0x8] sm:$0xff] %vm275_vm2, %v1363_v9 }
  0x11   : > { %1253 = vmatprep.subr.mxu0 %v1361_v0  ;;  %1258 = vmatprep.subr.mxu1 %v1361_v0  ;;  %v291_v7 = vld [vmem:[%s246_s22 + $0x10] sm:$0xff]  ;;  %v292_v8 = vld [vmem:[%s246_s22 + $0x18] sm:$0xff]  ;;  %278 = vst.msk [vmem:[#allocation2 + $0x10] sm:$0xff] %vm275_vm2, %v1363_v9  ;;  %279 = vst.msk [vmem:[#allocation2 + $0x18] sm:$0xff] %vm275_vm2, %v1363_v9 }
  0x12   : > { %280 = vst.msk [vmem:[#allocation3] sm:$0xff] %vm275_vm2, %v1361_v0  ;;  %281 = vst.msk [vmem:[#allocation3 + $0x8] sm:$0xff] %vm275_vm2, %v1361_v0  ;;  %v297_v39 = vld [vmem:[%s1488_s25] sm:$0xff]  ;;  %v298_v40 = vld [vmem:[%s1488_s25 + $0x8] sm:$0xff] }
  0x13   : > { %1246 = vmatmul.mubr.msk.f32.vlgmr.msra.gmra.mxu0 %vm284_vm0, %v289_v3  ;;  %1251 = vmatmul.mubr.msk.f32.vlgmr.msra.gmra.mxu1 %vm284_vm0, %v290_v4  ;;  %282 = vst.msk [vmem:[#allocation3 + $0x10] sm:$0xff] %vm275_vm2, %v1361_v0  ;;  %283 = vst.msk [vmem:[#allocation3 + $0x18] sm:$0xff] %vm275_vm2, %v1361_v0  ;;  %v299_v53 = vld [vmem:[%s1488_s25 + $0x10] sm:$0xff]  ;;  %v300_v56 = vld [vmem:[%s1488_s25 + $0x18] sm:$0xff] }
  0x14   : > { %1254 = vmatpush3.xpose.msk.msra.mxu0 %vm284_vm0, %v295_v5  ;;  %1255 = vmatprep.mubr.msk.f32.mxu0 %vm1362_vm1, %v1361_v0 }
  0x15   : > { %1259 = vmatpush3.xpose.msk.msra.mxu1 %vm284_vm0, %v296_v6  ;;  %1260 = vmatprep.mubr.msk.f32.mxu1 %vm1362_vm1, %v1361_v0 }
  0x16   : > { %1263 = vmatprep.subr.mxu0 %v1361_v0  ;;  %1268 = vmatprep.subr.mxu1 %v1361_v0  ;;  %v1463_v23 = vld [vmem:[#allocation2] sm:$0xff] }
  0x17   : > { %1256 = vmatmul.mubr.msk.f32.vlgmr.msra.gmra.mxu0 %vm284_vm0, %v291_v7  ;;  %v607_v26 = vld [vmem:[#allocation2 + $0x8] sm:$0xff] }
  0x18   : > { %1261 = vmatmul.mubr.msk.f32.vlgmr.msra.gmra.mxu1 %vm284_vm0, %v292_v8  ;;  %1265 = vmatprep.mubr.msk.f32.mxu0 %vm1362_vm1, %v1361_v0  ;;  %v1468_v27 = vld [vmem:[#allocation2 + $0x10] sm:$0xff]  ;;  %v1476_v33 = vld [vmem:[#allocation2 + $0x18] sm:$0xff] }
  0x19   : > { %1270 = vmatprep.mubr.msk.f32.mxu1 %vm1362_vm1, %v1361_v0  ;;  %1264 = vmatpush3.msra.mxu0 %v297_v39  ;;  %v670_v7 = vld [vmem:[#allocation3] sm:$0xff] }
  0x1a   : > { %1273 = vmatprep.subr.mxu0 %v1361_v0  ;;  %1269 = vmatpush3.msra.mxu1 %v298_v40 }
  0x1b   : > { %1278 = vmatprep.subr.mxu1 %v1361_v0 }
  0xd3   : > { %v374_v10 = vpop.f32.mrf.mxu0  ;;  %v450_v11 = vpop.f32.mrf.mxu1 }
  0xd4   : > { %v610_v12 = vsel %vm284_vm0, %v374_v10, -inf  ;;  %v613_v15 = vsel %vm284_vm0, %v450_v11, -inf }
  0xd5   : > { %611 = vmax.xlane.f32.xlu0 %v610_v12  ;;  %v1247_v13 = vpop.f32.mrf.mxu0  ;;  %v1252_v14 = vpop.f32.mrf.mxu1 }
  0xd6   : > { %v672_v14 = vld [vmem:[#allocation3 + $0x10] sm:$0xff] }
  0xd7   : > { %v526_v16 = vpop.f32.mrf.mxu0 }
  0xd8   : > { %v602_v17 = vpop.f32.mrf.mxu1  ;;  %v616_v18 = vsel %vm284_vm0, %v526_v16, -inf }
  0xd9   : > { %614 = vmax.xlane.f32.xlu0 %v613_v15  ;;  %v1257_v19 = vpop.f32.mrf.mxu0  ;;  %617 = vmax.xlane.f32.xlu1 %v616_v18  ;;  %v619_v21 = vsel %vm284_vm0, %v602_v17, -inf  ;;  %v673_v18 = vld [vmem:[#allocation3 + $0x18] sm:$0xff] }
  0xda   : > { %v1262_v20 = vpop.f32.mrf.mxu1 }
  0xdd   : > { %620 = vmax.xlane.f32.xlu1 %v619_v21 }
 0x15e   : > { %v612_v24 = vpop.xlane.xlu0 %611 }
 0x15f   : > { %v1466_v25 = vmax.f32 %v1463_v23, %v612_v24 }
 0x161   : > { %v626_v28 = vsub.f32 %v1463_v23, %v1466_v25  ;;  %1027 = vst.msk [vmem:[#allocation2] sm:$0xff] %vm275_vm2, %v1466_v25  ;;  %640 = vperm.xlu0 %1311, %v1466_v25  }
 0x162   : > { %v615_v29 = vpop.xlane.xlu0 %614  ;;  %v618_v30 = vpop.xlane.xlu1 %617 }
 0x163   : > { %v623_v31 = vmax.f32 %v607_v26, %v615_v29  ;;  %v624_v32 = vmax.f32 %v1468_v27, %v618_v30  ;;  %v630_v63 = vmul.f32 1.442695, %v626_v28 }
 0x165   : > { %v627_v34 = vsub.f32 %v607_v26, %v623_v31  ;;  %1028 = vst.msk [vmem:[#allocation2 + $0x8] sm:$0xff] %vm275_vm2, %v623_v31  ;;  %645 = vperm.xlu1 %1312, %v623_v31   ;;  %v628_v35 = vsub.f32 %v1468_v27, %v624_v32  ;;  %1029 = vst.msk [vmem:[#allocation2 + $0x10] sm:$0xff] %vm275_vm2, %v624_v32  ;;  %v699_v31 = vld [vmem:[#allocation4] sm:$0xff] }
 0x166   : > { %v621_v36 = vpop.xlane.xlu1 %620 }
 0x167   : > { %v625_v37 = vmax.f32 %v1476_v33, %v621_v36  ;;  %v632_v61 = vmul.f32 1.442695, %v627_v34  ;;  %v634_v2 = vmul.f32 1.442695, %v628_v35  ;;  %v700_v34 = vld [vmem:[#allocation4 + $0x8] sm:$0xff] }
 0x169   : > { %650 = vperm.xlu1 %1312, %v624_v32   ;;  %v629_v38 = vsub.f32 %v1476_v33, %v625_v37  ;;  %1030 = vst.msk [vmem:[#allocation2 + $0x18] sm:$0xff] %vm275_vm2, %v625_v37 }
 0x16b   : > { %v636_v3 = vmul.f32 1.442695, %v629_v38 }
 0x16d   : > { %655 = vperm.xlu1 %1312, %v625_v37  }
 0x1dc   : > { %v641_v41 = vpop.permute.xlu0 %640 }
 0x1dd   : > { %v658_v42 = vsub.f32 %v374_v10, %v641_v41  ;;  %v671_v10 = vld [vmem:[#allocation3 + $0x8] sm:$0xff]  ;;  %v701_v41 = vld [vmem:[#allocation4 + $0x10] sm:$0xff] }
 0x1df   : > { %v662_v43 = vmul.f32 1.442695, %v658_v42 }
 0x1e0   : > { %v646_v44 = vpop.permute.xlu1 %645 }
 0x1e1   : > { %1313 = vpow2.f32 %v662_v43  ;;  %v659_v45 = vsub.f32 %v450_v11, %v646_v44 }
 0x1e3   : > { %v664_v46 = vmul.f32 1.442695, %v659_v45 }
 0x1e4   : > { %v651_v47 = vpop.permute.xlu1 %650 }
 0x1e5   : > { %1315 = vpow2.f32 %v664_v46  ;;  %v660_v48 = vsub.f32 %v526_v16, %v651_v47  ;;  %v702_v46 = vld [vmem:[#allocation4 + $0x18] sm:$0xff] }
 0x1e7   : > { %v666_v49 = vmul.f32 1.442695, %v660_v48 }
 0x1e8   : > { %v656_v50 = vpop.permute.xlu1 %655 }
 0x1e9   : > { %1317 = vpow2.f32 %v666_v49  ;;  %v661_v51 = vsub.f32 %v602_v17, %v656_v50 }
 0x1eb   : > { %v668_v52 = vmul.f32 1.442695, %v661_v51 }
 0x1ed   : > { %1319 = vpow2.f32 %v668_v52 }
 0x1ee   : > { %v1314_v54 = vpop.eup %1313  ;;  %1321 = vpow2.f32 %v632_v61 }
 0x1ef   : > { %1266 = vmatmul.mubr.msk.f32.vlgmr.msra.gmra.mxu0 %vm284_vm0, %v1314_v54  ;;  %v678_v55 = vsel %vm284_vm0, %v1314_v54, 0.0  ;;  %1323 = vpow2.f32 %v630_v63 }
 0x1f0   : > { %679 = vadd.xlane.f32.xlu1 %v678_v55  ;;  %1274 = vmatpush3.msra.mxu0 %v299_v53  ;;  %1325 = vpow2.f32 %v634_v2 }
 0x1f1   : > { %1275 = vmatprep.mubr.msk.f32.mxu0 %vm1362_vm1, %v1361_v0  ;;  %1327 = vpow2.f32 %v636_v3 }
 0x1f2   : > { %v1316_v57 = vpop.eup %1315 }
 0x1f3   : > { %1271 = vmatmul.mubr.msk.f32.vlgmr.msra.gmra.mxu1 %vm284_vm0, %v1316_v57  ;;  %v681_v58 = vsel %vm284_vm0, %v1316_v57, 0.0 }
 0x1f4   : > { %682 = vadd.xlane.f32.xlu0 %v681_v58  ;;  %1279 = vmatpush3.msra.mxu1 %v300_v56 }
 0x1f5   : > { %1280 = vmatprep.mubr.msk.f32.mxu1 %vm1362_vm1, %v1361_v0 }
 0x1f6   : > { %v1318_v59 = vpop.eup %1317 }
 0x1f7   : > { %1276 = vmatmul.mubr.msk.f32.vlgmr.msra.gmra.mxu0 %vm284_vm0, %v1318_v59  ;;  %v684_v60 = vsel %vm284_vm0, %v1318_v59, 0.0 }
 0x1f8   : > { %685 = vadd.xlane.f32.xlu1 %v684_v60 }
 0x1fa   : > { %v1320_v62 = vpop.eup %1319 }
 0x1fb   : > { %1281 = vmatmul.mubr.msk.f32.vlgmr.msra.gmra.mxu1 %vm284_vm0, %v1320_v62  ;;  %v687_v1 = vsel %vm284_vm0, %v1320_v62, 0.0  ;;  %v1322_v0 = vpop.eup %1321 }
 0x1fc   : > { %688 = vadd.xlane.f32.xlu1 %v687_v1  ;;  %v1324_v4 = vpop.eup %1323  ;;  %v675_v12 = vmul.f32 %v1322_v0, %v671_v10 }
 0x1fd   : > { %v1326_v5 = vpop.eup %1325  ;;  %v674_v8 = vmul.f32 %v1324_v4, %v670_v7 }
 0x1fe   : > { %v1328_v6 = vpop.eup %1327  ;;  %v676_v16 = vmul.f32 %v1326_v5, %v672_v14 }
 0x1ff   : > { %v677_v21 = vmul.f32 %v1328_v6, %v673_v18 }
 0x20a   : > { %710 = vperm.xlu0 %1311, %v1322_v0  }
 0x20d   : > { %705 = vperm.xlu1 %1312, %v1324_v4  }
 0x211   : > { %715 = vperm.xlu1 %1312, %v1326_v5  }
 0x215   : > { %720 = vperm.xlu1 %1312, %v1328_v6  }
 0x279   : > { %v680_v9 = vpop.xlane.xlu1 %679 }
 0x27a   : > { %v690_v11 = vadd.f32 %v680_v9, %v674_v8 }
 0x27c   : > { %695 = vst.msk [vmem:[#allocation3] sm:$0xff] %vm275_vm2, %v690_v11 }
 0x27d   : > { %v683_v13 = vpop.xlane.xlu0 %682 }
 0x27e   : > { %v691_v15 = vadd.f32 %v683_v13, %v675_v12 }
 0x280   : > { %696 = vst.msk [vmem:[#allocation3 + $0x8] sm:$0xff] %vm275_vm2, %v691_v15 }
 0x281   : > { %v686_v17 = vpop.xlane.xlu1 %685 }
 0x282   : > { %v692_v19 = vadd.f32 %v686_v17, %v676_v16 }
 0x283   : > { %v1034_v20 = vld [vmem:[#allocation3] sm:$0xff] }
 0x284   : > { %697 = vst.msk [vmem:[#allocation3 + $0x10] sm:$0xff] %vm275_vm2, %v692_v19  ;;  %1329 = vrcp.f32 %v1034_v20 }
 0x285   : > { %v689_v22 = vpop.xlane.xlu1 %688  ;;  %v711_v35 = vpop.permute.xlu0 %710 }
 0x286   : > { %v693_v23 = vadd.f32 %v689_v22, %v677_v21  ;;  %v724_v40 = vmul.f32 %v711_v35, %v700_v34 }
 0x287   : > { %v1035_v24 = vld [vmem:[#allocation3 + $0x8] sm:$0xff] }
 0x288   : > { %698 = vst.msk [vmem:[#allocation3 + $0x18] sm:$0xff] %vm275_vm2, %v693_v23  ;;  %1331 = vrcp.f32 %v1035_v24 }
 0x289   : > { %v706_v32 = vpop.permute.xlu1 %705 }
 0x28a   : > { %v723_v33 = vmul.f32 %v706_v32, %v699_v31 }
 0x28b   : > { %v1036_v25 = vld [vmem:[#allocation3 + $0x10] sm:$0xff] }
 0x28c   : > { %1333 = vrcp.f32 %v1036_v25 }
 0x28d   : > { %v716_v38 = vpop.permute.xlu1 %715 }
 0x28e   : > { %v725_v45 = vmul.f32 %v716_v38, %v701_v41 }
 0x28f   : > { %v1037_v26 = vld [vmem:[#allocation3 + $0x18] sm:$0xff] }
 0x290   : > { %1335 = vrcp.f32 %v1037_v26 }
 0x291   : > { %v1330_v27 = vpop.eup %1329  ;;  %v721_v47 = vpop.permute.xlu1 %720 }
 0x292   : > { %1048 = vperm.xlu1 %1312, %v1330_v27   ;;  %v726_v51 = vmul.f32 %v721_v47, %v702_v46 }
 0x295   : > { %v1332_v28 = vpop.eup %1331 }
 0x296   : > { %1053 = vperm.xlu0 %1311, %v1332_v28  }
 0x299   : > { %v1334_v29 = vpop.eup %1333 }
 0x29a   : > { %1058 = vperm.xlu1 %1312, %v1334_v29  }
 0x29d   : > { %v1336_v30 = vpop.eup %1335 }
 0x29e   : > { %1063 = vperm.xlu0 %1311, %v1336_v30  }
 0x2af   : > { %v796_v36 = vpop.f32.mrf.mxu0 }
 0x2b0   : > { %v1019_v37 = vadd.f32 %v796_v36, %v723_v33 }
 0x2b1   : > { %v1267_v39 = vpop.f32.mrf.mxu0 }
 0x2b2   : > { %1023 = vst.msk [vmem:[#allocation4] sm:$0xff] %vm284_vm0, %v1019_v37 }
 0x2b3   : > { %v869_v42 = vpop.f32.mrf.mxu1 }
 0x2b4   : > { %v1020_v43 = vadd.f32 %v869_v42, %v724_v40 }
 0x2b5   : > { %v1272_v44 = vpop.f32.mrf.mxu1 }
 0x2b6   : > { %1024 = vst.msk [vmem:[#allocation4 + $0x8] sm:$0xff] %vm284_vm0, %v1020_v43 }
 0x2b7   : > { %v942_v48 = vpop.f32.mrf.mxu0 }
 0x2b8   : > { %v1021_v49 = vadd.f32 %v942_v48, %v725_v45 }
 0x2b9   : > { %v1277_v50 = vpop.f32.mrf.mxu0  ;;  %v1042_v56 = vld [vmem:[#allocation4] sm:$0xff] }
 0x2ba   : > { %1025 = vst.msk [vmem:[#allocation4 + $0x10] sm:$0xff] %vm284_vm0, %v1021_v49 }
 0x2bb   : > { %v1015_v52 = vpop.f32.mrf.mxu1 }
 0x2bc   : > { %v1022_v53 = vadd.f32 %v1015_v52, %v726_v51 }
 0x2bd   : > { %v1282_v54 = vpop.f32.mrf.mxu1  ;;  %v1043_v58 = vld [vmem:[#allocation4 + $0x8] sm:$0xff] }
 0x2be   : > { %1026 = vst.msk [vmem:[#allocation4 + $0x18] sm:$0xff] %vm284_vm0, %v1022_v53 }
 0x2c1   : > { %v1044_v62 = vld [vmem:[#allocation4 + $0x10] sm:$0xff] }
 0x2c5   : > { %v1045_v2 = vld [vmem:[#allocation4 + $0x18] sm:$0xff] }
 0x30d   : > { %v1049_v55 = vpop.permute.xlu1 %1048 }
 0x30e   : > { %v1066_v57 = vmul.f32 %v1049_v55, %v1042_v56 }
 0x310   : > { %1070 = vst.msk [vmem:[%s270_s28] sm:$0xff] %vm284_vm0, %v1066_v57 }
 0x311   : > { %v1054_v59 = vpop.permute.xlu0 %1053 }
 0x312   : > { %v1067_v60 = vmul.f32 %v1054_v59, %v1043_v58 }
 0x314   : > { %1071 = vst.msk [vmem:[%s270_s28 + $0x8] sm:$0xff] %vm284_vm0, %v1067_v60 }
 0x315   : > { %v1059_v61 = vpop.permute.xlu1 %1058 }
 0x316   : > { %v1068_v63 = vmul.f32 %v1059_v61, %v1044_v62 }
 0x318   : > { %1072 = vst.msk [vmem:[%s270_s28 + $0x10] sm:$0xff] %vm284_vm0, %v1068_v63 }
 0x319   : > { %v1064_v1 = vpop.permute.xlu0 %1063 }
 0x31a   : > { %v1069_v3 = vmul.f32 %v1064_v1, %v1045_v2 }
 0x31c   : > { %1073 = vst.msk [vmem:[%s270_s28 + $0x18] sm:$0xff] %vm284_vm0, %v1069_v3 }
 0x31d PF: > { %s13_s14 = sadd.s32 1, %s1359_s14   ;;  %s1537_s12 = smov %s1355_s13 }
 0x31e   : > { %p10_p5 = scmp.ge.s32.totalorder %s13_s14, 4   ;;  %s1538_s13 = smov %s1540_s15 }
 0x320   :  { %12 = sbr.rel (!%p10_p5) target bundleno = 2 (0x2), region = 76 }

</bundles_post_ra>
